<compile_context>
chip_gen: v7x
topology: tpu7x:2x2x1
jax: 0.10.0
libtpu: 0.0.40
codegen_flags: <defaults>
</compile_context>

<pallas_src>
import jax
import jax.numpy as jnp
from jax.experimental import pallas as pl
from jax.experimental.pallas import tpu as pltpu


def _bow_fused_kernel(tok_ref, scaled_ref, out_ref):
    """Fused position-weighted bag-of-words embedding for one (T, Wm) token tile.

    tok_ref    : (T, Wm) int32  token ids (sentinel >= Wm*V contributes zero)
    scaled_ref : (Wm*V, E) f32  stacked table*pos (word-major on sublanes)
    out_ref    : (T, E)  f32
    """
    toks = tok_ref[...]                       # (T, Wm) int32
    scaled = scaled_ref[...]                  # (Wm*V, E) f32
    T, Wm = toks.shape
    WV, E = scaled.shape
    V = WV // Wm

    # Single hoisted iota over the fused (word, vocab) lane axis.
    lanes = jax.lax.broadcasted_iota(jnp.int32, (T, WV), 1)

    # onehot[t, w*V + v] = (tok[t, w] == v); each word position hits a disjoint
    # vocab block, so a logical OR over the Wm compares builds the fused one-hot.
    # Sentinel ids (>= WV after the +w*V offset) never match -> zero contribution.
    hits = (toks[:, 0:1] + 0 * V) == lanes
    for w in range(1, Wm):                    # Wm is small & static: unrolled compares
        hits = hits | ((toks[:, w : w + 1] + w * V) == lanes)
    onehot = hits.astype(jnp.float32)         # (T, WV)

    # One MXU matmul per tile: (T, WV) @ (WV, E).
    out_ref[...] = jnp.dot(onehot, scaled, preferred_element_type=jnp.float32)


def _pick_tile_t(T, max_tile=128):
    """Row-tile size: as large as possible (<=128 for all MXU generations) while
    keeping >=2 grid steps so both v7x TensorCores get work on tiny inputs."""
    if T <= 8:
        return 8
    half = -(-T // 2)               # ceil(T / 2)
    half = -(-half // 8) * 8        # round up to a sublane multiple
    return min(max_tile, half)


def bag_of_words_embed(tokens, scaled_table, *, tile_t=None):
    """tokens: (T, Wm) int32, scaled_table: (Wm*V, E) f32 -> (T, E) f32."""
    T, Wm = tokens.shape
    WV, E = scaled_table.shape
    if tile_t is None:
        tile_t = _pick_tile_t(T)

    T_pad = pl.cdiv(T, tile_t) * tile_t
    # Pad rows with the out-of-range sentinel (== WV): padded rows compute exact 0.
    tokens_p = jnp.pad(tokens, ((0, T_pad - T), (0, 0)), constant_values=WV)

    out = pl.pallas_call(
        _bow_fused_kernel,
        out_shape=jax.ShapeDtypeStruct((T_pad, E), jnp.float32),
        grid_spec=pltpu.PrefetchScalarGridSpec(
            num_scalar_prefetch=0,
            grid=(T_pad // tile_t,),
            in_specs=[
                pl.BlockSpec((tile_t, Wm), lambda i: (i, 0)),   # token row tile
                pl.BlockSpec((WV, E), lambda i: (0, 0)),        # resident scaled table
            ],
            out_specs=pl.BlockSpec((tile_t, E), lambda i: (i, 0)),
        ),
        compiler_params=pltpu.CompilerParams(
            dimension_semantics=("parallel",)),
    )(tokens_p, scaled_table)
    return out[:T]


class InputModulePallas:
    """JAX/Pallas equivalent of the PyTorch InputModule."""

    def __init__(self, config, key):
        vocab, sym = config["vocab_size"], config["symbol_size"]
        lim = config["init_limit"]
        self.word_embed = jax.random.uniform(
            key, (vocab, sym), jnp.float32, minval=-lim, maxval=lim)
        self.pos_embed = jnp.ones((config["max_seq"], sym),
                                  jnp.float32) / config["max_seq"]

    def __call__(self, story, query):
        # story: (B, S, W) int32, query: (B, Wq) int32
        B, S, W = story.shape
        _, Wq = query.shape
        V, E = self.word_embed.shape

        Wm = max(W, Wq)
        sentinel = Wm * V  # out-of-range token id -> zero one-hot row -> zero contribution

        # Pre-stack the position-scaled table once: scaled[w*V + v] = table[v] * pos[w].
        scaled_table = (self.word_embed[None, :, :]
                        * self.pos_embed[:Wm, None, :]).reshape(Wm * V, E)

        # Merge story rows and query rows into a single pallas_call.
        story_flat = story.reshape(B * S, W)
        story_p = jnp.pad(story_flat, ((0, 0), (0, Wm - W)),
                          constant_values=sentinel)
        query_p = jnp.pad(query, ((0, 0), (0, Wm - Wq)),
                          constant_values=sentinel)
        tokens = jnp.concatenate([story_p, query_p], axis=0)   # (B*S + B, Wm)

        out = bag_of_words_embed(tokens, scaled_table)         # (B*S + B, E)
        sentence_sum = out[: B * S].reshape(B, S, E)
        query_sum = out[B * S:]
        return sentence_sum, query_sum


def _reference(story, query, table, pos):
    sent_e = table[story]                                   # (B, S, W, E)
    sent_sum = jnp.einsum("bswe,we->bse", sent_e, pos[: story.shape[2]])
    q_e = table[query]                                      # (B, Wq, E)
    q_sum = jnp.einsum("bwe,we->be", q_e, pos[: query.shape[1]])
    return sent_sum, q_sum


if __name__ == "__main__":
    config = dict(vocab_size=16, symbol_size=32, max_seq=12, init_limit=0.1)
    key = jax.random.PRNGKey(0)
    k_embed, k_story, k_query = jax.random.split(key, 3)

    module = InputModulePallas(config, k_embed)

    B, S, W, Wq = 2, 4, 6, 5
    story = jax.random.randint(k_story, (B, S, W), 0, config["vocab_size"],
                               dtype=jnp.int32)
    query = jax.random.randint(k_query, (B, Wq), 0, config["vocab_size"],
                               dtype=jnp.int32)

    sentence_sum, query_sum = module(story, query)
    jax.block_until_ready((sentence_sum, query_sum))

    ref_sent, ref_query = _reference(story, query, module.word_embed,
                                     module.pos_embed)
    assert sentence_sum.shape == (B, S, config["symbol_size"])
    assert query_sum.shape == (B, config["symbol_size"])
    assert jnp.allclose(sentence_sum, ref_sent, atol=1e-5)
    assert jnp.allclose(query_sum, ref_query, atol=1e-5)

    print("KERNEL_OK")
</pallas_src>

<mosaic_0001>
module attributes {stable_mosaic.version = 11 : i64} {
  func.func @_bow_fused_kernel(%arg0: i32, %arg1: memref<8x6xi32, #tpu.memory_space<vmem>>, %arg2: memref<96x32xf32, #tpu.memory_space<vmem>>, %arg3: memref<8x32xf32, #tpu.memory_space<vmem>>) attributes {dimension_semantics = [#tpu.dimension_semantics<parallel>], iteration_bounds = array<i64: 2>, scalar_prefetch = 0 : i64, scratch_operands = 0 : i64, tpu.core_type = #tpu.core_type<tc>, window_params = [{transform_indices = @transform_0, window_bounds = array<i64: 8, 6>}, {pipeline_mode = #tpu.pipeline_mode<synchronous>, transform_indices = @transform_1, window_bounds = array<i64: 96, 32>}, {transform_indices = @transform_2, window_bounds = array<i64: 8, 32>}]} {
    %c0 = arith.constant 0 : index
    %c0_0 = arith.constant 0 : index
    %0 = vector.load %arg1[%c0, %c0_0] : memref<8x6xi32, #tpu.memory_space<vmem>>, vector<8x6xi32>
    %c0_1 = arith.constant 0 : index
    %c0_2 = arith.constant 0 : index
    %1 = vector.load %arg2[%c0_1, %c0_2] : memref<96x32xf32, #tpu.memory_space<vmem>>, vector<96x32xf32>
    %2 = tpu.iota {dimensions = array<i32: 1>} : vector<8x96xi32>
    %3 = vector.extract_strided_slice %0 {offsets = [0, 0], sizes = [8, 1], strides = [1, 1]} : vector<8x6xi32> to vector<8x1xi32>
    %c0_i32 = arith.constant 0 : i32
    %4 = vector.broadcast %c0_i32 : i32 to vector<8x1xi32>
    %5 = arith.addi %3, %4 : vector<8x1xi32>
    %6 = vector.broadcast %5 : vector<8x1xi32> to vector<8x96xi32>
    %7 = arith.cmpi eq, %6, %2 : vector<8x96xi32>
    %8 = vector.extract_strided_slice %0 {offsets = [0, 1], sizes = [8, 1], strides = [1, 1]} : vector<8x6xi32> to vector<8x1xi32>
    %c16_i32 = arith.constant 16 : i32
    %9 = vector.broadcast %c16_i32 : i32 to vector<8x1xi32>
    %10 = arith.addi %8, %9 : vector<8x1xi32>
    %11 = vector.broadcast %10 : vector<8x1xi32> to vector<8x96xi32>
    %12 = arith.cmpi eq, %11, %2 : vector<8x96xi32>
    %13 = arith.ori %7, %12 : vector<8x96xi1>
    %14 = vector.extract_strided_slice %0 {offsets = [0, 2], sizes = [8, 1], strides = [1, 1]} : vector<8x6xi32> to vector<8x1xi32>
    %c32_i32 = arith.constant 32 : i32
    %15 = vector.broadcast %c32_i32 : i32 to vector<8x1xi32>
    %16 = arith.addi %14, %15 : vector<8x1xi32>
    %17 = vector.broadcast %16 : vector<8x1xi32> to vector<8x96xi32>
    %18 = arith.cmpi eq, %17, %2 : vector<8x96xi32>
    %19 = arith.ori %13, %18 : vector<8x96xi1>
    %20 = vector.extract_strided_slice %0 {offsets = [0, 3], sizes = [8, 1], strides = [1, 1]} : vector<8x6xi32> to vector<8x1xi32>
    %c48_i32 = arith.constant 48 : i32
    %21 = vector.broadcast %c48_i32 : i32 to vector<8x1xi32>
    %22 = arith.addi %20, %21 : vector<8x1xi32>
    %23 = vector.broadcast %22 : vector<8x1xi32> to vector<8x96xi32>
    %24 = arith.cmpi eq, %23, %2 : vector<8x96xi32>
    %25 = arith.ori %19, %24 : vector<8x96xi1>
    %26 = vector.extract_strided_slice %0 {offsets = [0, 4], sizes = [8, 1], strides = [1, 1]} : vector<8x6xi32> to vector<8x1xi32>
    %c64_i32 = arith.constant 64 : i32
    %27 = vector.broadcast %c64_i32 : i32 to vector<8x1xi32>
    %28 = arith.addi %26, %27 : vector<8x1xi32>
    %29 = vector.broadcast %28 : vector<8x1xi32> to vector<8x96xi32>
    %30 = arith.cmpi eq, %29, %2 : vector<8x96xi32>
    %31 = arith.ori %25, %30 : vector<8x96xi1>
    %32 = vector.extract_strided_slice %0 {offsets = [0, 5], sizes = [8, 1], strides = [1, 1]} : vector<8x6xi32> to vector<8x1xi32>
    %c80_i32 = arith.constant 80 : i32
    %33 = vector.broadcast %c80_i32 : i32 to vector<8x1xi32>
    %34 = arith.addi %32, %33 : vector<8x1xi32>
    %35 = vector.broadcast %34 : vector<8x1xi32> to vector<8x96xi32>
    %36 = arith.cmpi eq, %35, %2 : vector<8x96xi32>
    %37 = arith.ori %31, %36 : vector<8x96xi1>
    %38 = arith.extui %37 : vector<8x96xi1> to vector<8x96xi32>
    %39 = arith.sitofp %38 : vector<8x96xi32> to vector<8x96xf32>
    %cst = arith.constant dense<0.000000e+00> : vector<8x32xf32>
    %40 = tpu.matmul %39, %1, %cst {dimension_numbers = #tpu.dot_dimension_numbers<[1], [0], [0], [1], [0, 0, 1, 1], [], []>} : vector<8x96xf32>, vector<96x32xf32>, vector<8x32xf32> -> vector<8x32xf32>
    %c0_3 = arith.constant 0 : index
    %c0_4 = arith.constant 0 : index
    %41 = vector.load %arg3[%c0_3, %c0_4] : memref<8x32xf32, #tpu.memory_space<vmem>>, vector<8x32xf32>
    tpu.vector_store %arg3[%c0_3, %c0_4], %40 {strides = array<i32>} : memref<8x32xf32, #tpu.memory_space<vmem>>, vector<8x32xf32>,
    return
  }
  func.func @transform_0(%arg0: i32) -> (i32, i32) {
    %c0_i32 = arith.constant 0 : i32
    %c0_i32_0 = arith.constant 0 : i32
    return %arg0, %c0_i32 : i32, i32
  }
  func.func @transform_1(%arg0: i32) -> (i32, i32) {
    %c0_i32 = arith.constant 0 : i32
    %c0_i32_0 = arith.constant 0 : i32
    %c0_i32_1 = arith.constant 0 : i32
    return %c0_i32, %c0_i32_0 : i32, i32
  }
  func.func @transform_2(%arg0: i32) -> (i32, i32) {
    %c0_i32 = arith.constant 0 : i32
    %c0_i32_0 = arith.constant 0 : i32
    return %arg0, %c0_i32 : i32, i32
  }
}

</mosaic_0001>

<bundles_post_ra>
// kernel: tpu_custom_call.1
= control target key start
LH: loop header
LB: loop body
LE: loop exit
PB: predicated region body
PF: predicated region fallthrough
CT: control target
= control target key end

     0   :  { %7 = vsyncpa [#allocation3], 0  ;;  %s688_s0 = inlined_call_operand.vmem [shape: s32[16,6], index: 0, kind: input, shape index: {}]   ;;  %s689_s1 = inlined_call_operand.vmem [shape: f32[96,32], index: 1, kind: input, shape index: {}]   ;;  %s690_s2 = inlined_call_operand.hbm [shape: f32[16,32], index: 2, kind: output, shape index: {}]  }
   0x1   :  { %9 = vsyncpa [#allocation3 + $0x1], 0  ;;  %s552_s9 = smov 0   ;;  %s554_s10 = smov 0  }
   0x2   :  { %s556_s11 = smov 0   ;;  %s558_s12 = smov 0  }
   0x3 LB: > { %s573_s13 = sadd.s32 4294967295, %s525_s12   ;;  %s339_s14 = sadd.s32 4294967294, %s525_s12   ;;  %s525_s12 = sphi %s558_s12, %s696_s12   ;;  %s521_s11 = sphi %s556_s11, %s695_s11   ;;  %s517_s10 = sphi %s554_s10, %s694_s10   ;;  %s513_s9 = sphi %s552_s9, %s693_s9  }
   0x4   : > { %s577_s15 = sadd.s32 1, %s525_s12   ;;  %s69_s16 = sadd.s32 1, %s521_s11 }
   0x5   : > { %s66_s17 = ssub.s32 %s525_s12, %s577_s15  ;;  %p79_p0 = scmp.ne.s32.totalorder %s521_s11, %s517_s10 }
   0x6   : > { %p67_p1 = scmp.eq.s32.totalorder %s66_s17, 0  ;;  %p80_p2 = scmp.eq.s32.totalorder %s573_s13, 1 }
   0x7   : > { %p85_p3 = scmp.ne.s32.totalorder %s517_s10, %s513_s9  ;;  %p86_p4 = scmp.eq.s32.totalorder %s339_s14, 1 }
   0x8   : > { %s588_s18 = scalar_select %p67_p1, %s521_s11, %s69_s16  }
   0x9   : > { %p590_p5 = por %p80_p2, %p79_p0  ;;  %p594_p6 = por %p86_p4, %p85_p3 }
   0xa   : > { %p342_p7 = scmp.ge.s32.totalorder %s525_s12, 1  ;;  %p114_p8 = scmp.lt.s32.totalorder %s525_s12, 3 }
   0xc   : > { %p115_p9 = pnand %p342_p7, %p114_p8 }
   0xd   : > { %p135_p10 = scmp.lt.s32.totalorder (!%p115_p9), %s573_s13, 1  ;;  %v140_v0 = vld [vmem:[%s689_s1] sm:$0xff] (!%p115_p9)  ;;  %v527_v1 = vmov (!%p115_p9), 0   ;;  %v528_v2 = vmov (!%p115_p9), 2   ;;  %v141_v3 = vld [vmem:[%s689_s1 + $0x8] sm:$0xff] (!%p115_p9)  ;;  %v142_v4 = vld [vmem:[%s689_s1 + $0x10] sm:$0xff] (!%p115_p9)  ;;  %v152_v32 = vlaneseq (!%p115_p9) }
   0xe   : > { %118 = sbr.rel (%p115_p9) target bundleno = 396 (0x18c), region = 28  ;;  %457 = vset.pattern.permute.xlu0 (!%p115_p9), %v527_v1  ;;  %459 = vset.pattern.permute.xlu1 (!%p115_p9), %v528_v2  ;;  %v143_v5 = vld [vmem:[%s689_s1 + $0x18] sm:$0xff] (!%p115_p9)  ;;  %v529_v6 = vmov (!%p115_p9), 0.0|0.0   ;;  %v392_v7 = vpack.c.bf16 (!%p115_p9), %v141_v3, %v140_v0  ;;  %v144_v9 = vld [vmem:[%s689_s1 + $0x20] sm:$0xff] (!%p115_p9)  ;;  %v145_v10 = vld [vmem:[%s689_s1 + $0x28] sm:$0xff] (!%p115_p9)  ;;  %v530_v18 = vmov (!%p115_p9), 1  }
   0xf   : > { %391 = vmatprep.subr.bf16.mxu0 (!%p115_p9), %v529_v6  ;;  %v395_v8 = vpack.c.bf16 (!%p115_p9), %v143_v5, %v142_v4  ;;  %v398_v14 = vpack.c.bf16 (!%p115_p9), %v145_v10, %v144_v9  ;;  %v146_v15 = vld [vmem:[%s689_s1 + $0x30] sm:$0xff] (!%p115_p9)  ;;  %v147_v16 = vld [vmem:[%s689_s1 + $0x38] sm:$0xff] (!%p115_p9)  ;;  %v531_v20 = vmov (!%p115_p9), 3   ;;  %v148_v22 = vld [vmem:[%s689_s1 + $0x40] sm:$0xff] (!%p115_p9)  ;;  %v532_v25 = vmov (!%p115_p9), 5   ;;  %s132_s3 = sand.u32 (!%p115_p9), 1, %s517_s10  }
  0x10   : > { %393 = vmatpush3.bf16.msra.mxu0 (!%p115_p9), %v392_v7  ;;  %v401_v19 = vpack.c.bf16 (!%p115_p9), %v147_v16, %v146_v15  ;;  %v149_v23 = vld [vmem:[%s689_s1 + $0x48] sm:$0xff] (!%p115_p9)  ;;  %v150_v27 = vld [vmem:[%s689_s1 + $0x50] sm:$0xff] (!%p115_p9)  ;;  %v151_v28 = vld [vmem:[%s689_s1 + $0x58] sm:$0xff] (!%p115_p9)  ;;  %v533_v29 = vmov (!%p115_p9), 4   ;;  %vm534_vm0 = vmmov (!%p115_p9), 0   ;;  %v535_v31 = vmov (!%p115_p9), 0.0  }
  0x11   : > { %394 = vmatprep.subr.bf16.mxu0 (!%p115_p9), %v529_v6  ;;  %v404_v26 = vpack.c.bf16 (!%p115_p9), %v149_v23, %v148_v22  ;;  %v407_v30 = vpack.c.bf16 (!%p115_p9), %v151_v28, %v150_v27  ;;  %388 = vmatprep.mubr.msk.f32.mxu0 (!%p115_p9), %vm534_vm0, %v535_v31  ;;  %v153_v34 = vand.u32 (!%p115_p9), 127, %v152_v32  ;;  %vm190_vm11 = vcmask (!%p115_p9), 785408   ;;  %s343_s4 = sshll.u32 (!%p115_p9), %s132_s3, 3  ;;  %s267_s17 = scalar_lea.sflag (!%p115_p9), [#allocation3], %s132_s3 }
  0x12   : > { %s134_s6 = scalar_lea.vmem (!%p115_p9), [#allocation2], %s343_s4  ;;  %vm264_vm13 = vcmask (!%p115_p9), 261120  }
  0x13   : > { %s280_s7 = sshll.u32 (!%p115_p9), %s134_s6, 4  ;;  %s648_s7 = int_to_ptr.vmem [resolvable:$true] %s280_s7 }
  0x14   : > { %396 = vmatpush3.bf16.msra.mxu0 (!%p115_p9), %v395_v8  ;;  %s463_s21 = scalar_lea.vmem (!%p115_p9), %s648_s7, 128 }
  0x15   : > { %s136_s29 = scalar_select %p135_p10, %s573_s13, 1  ;;  %397 = vmatprep.subr.bf16.mxu0 %v529_v6 }
  0x16   : > { %p464_p11 = scmp.ne.s32.totalorder %s648_s7, %s463_s21 }
  0x17   : > { %s344_s30 = sshll.u32 %s136_s29, 3 }
  0x18   : > { %s138_s5 = scalar_lea.vmem %s688_s0, %s344_s30  ;;  %399 = vmatpush3.bf16.msra.mxu0 %v398_v14  ;;  %p465_p12 = pnand %p464_p11, %p590_p5 }
  0x19   : > { %v139_v11 = vld [vmem:[%s138_s5] sm:$0xff]  ;;  %400 = vmatprep.subr.bf16.mxu0 %v529_v6  ;;  %s348_s5 = sshll.u32 %s573_s13, 7  ;;  %s536_s13 = smov [#allocation2]  }
  0x1a   : > { %155 = vperm.xlu0 %457, %v139_v11   ;;  %v164_v12 = vadd.s32 32, %v139_v11  ;;  %v158_v13 = vadd.s32 16, %v139_v11  ;;  %v170_v17 = vadd.s32 48, %v139_v11  ;;  %v182_v21 = vadd.s32 80, %v139_v11  ;;  %s646_s16 = scalar_lea.hbm %s690_s2, %s348_s5  ;;  %p466_p13 = pneg %p465_p12 }
  0x1b   : > { %v176_v24 = vadd.s32 64, %v139_v11  ;;  %s467_s22 = sshll.u32 %s536_s13, 4  ;;  %s468_s22 = int_to_ptr.vmem [resolvable:$false] %s467_s22 }
  0x1c   : > { %166 = vperm.xlu1 %459, %v164_v12   ;;  %402 = vmatpush3.bf16.msra.mxu0 %v401_v19  ;;  %s469_s23 = scalar_lea.vmem %s468_s22, 256  ;;  %p470_p0 = scmp.lt.s32.totalorder %s648_s7, %s468_s22 }
  0x1d   : > { %403 = vmatprep.subr.bf16.mxu0 %v529_v6  ;;  %p471_p1 = scmp.lt.s32.totalorder %s469_s23, %s463_s21 }
  0x1e   : > { %458 = vset.pattern.permute.xlu0 %v530_v18 }
  0x1f   : > { %160 = vperm.xlu0 %458, %v158_v13   ;;  %p472_p2 = por %p471_p1, %p470_p0 }
  0x20   : > { %460 = vset.pattern.permute.xlu1 %v531_v20  ;;  %405 = vmatpush3.bf16.msra.mxu0 %v404_v26 }
  0x21   : > { %172 = vperm.xlu1 %460, %v170_v17   ;;  %406 = vmatprep.subr.bf16.mxu0 %v529_v6  ;;  %p473_p3 = pnand %p472_p2, %p466_p13 }
  0x23   : > { %462 = vset.pattern.permute.xlu0 %v532_v25 }
  0x24   : > { %184 = vperm.xlu0 %462, %v182_v21   ;;  %408 = vmatpush3.bf16.msra.mxu0 %v407_v30 }
  0x25   : > { %461 = vset.pattern.permute.xlu1 %v533_v29 }
  0x26   : > { %178 = vperm.xlu1 %461, %v176_v24  }
  0x99   : > { %v156_v33 = vpop.permute.xlu0 %155 }
  0x9a   : > { %vm157_vm1 = vcmp.eq.s32.totalorder %v156_v33, %v153_v34 }
  0x9b   : > { %v167_v35 = vpop.permute.xlu1 %166 }
  0x9c   : > { %vm168_vm4 = vcmp.eq.s32.totalorder %v167_v35, %v153_v34 }
  0x9e   : > { %v161_v36 = vpop.permute.xlu0 %160 }
  0x9f   : > { %vm162_vm2 = vcmp.eq.s32.totalorder %v161_v36, %v153_v34 }
  0xa0   : > { %vm163_vm3 = vmor %vm157_vm1, %vm162_vm2  ;;  %v173_v37 = vpop.permute.xlu1 %172 }
  0xa1   : > { %vm169_vm5 = vmor %vm163_vm3, %vm168_vm4  ;;  %vm174_vm6 = vcmp.eq.s32.totalorder %v173_v37, %v153_v34 }
  0xa2   : > { %vm175_vm8 = vmor %vm169_vm5, %vm174_vm6 }
  0xa3   : > { %v185_v38 = vpop.permute.xlu0 %184 }
  0xa4   : > { %vm186_vm7 = vcmp.eq.s32.totalorder %v185_v38, %v153_v34 }
  0xa5   : > { %v179_v39 = vpop.permute.xlu1 %178 }
  0xa6   : > { %vm180_vm9 = vcmp.eq.s32.totalorder %v179_v39, %v153_v34 }
  0xa7   : > { %vm181_vm10 = vmor %vm175_vm8, %vm180_vm9 }
  0xa8   : > { %vm187_vm12 = vmor %vm181_vm10, %vm186_vm7 }
  0xa9   : > { %v345_v40 = vsel %vm187_vm12, 1.0, %v535_v31 }
  0xaa   : > { %389 = vmatmul.mubr.msk.f32.vlgmr.msra.gmra.mrb[0].mxu0 %vm190_vm11, %v345_v40 }
 0x17d   : > { %v260_v41 = vpop.f32.mrb[0].mxu0 }
 0x17e   : > { %265 = vst.msk [vmem:[%s134_s6] sm:$0xff] %vm264_vm13, %v260_v41  ;;  %v390_v42 = vpop.f32.mrb[1].mxu0 }
 0x17f   : > { %476 = shalt.err (!%p473_p3)
}
 0x180   : > { %s477_s24 = scalar_lea.hbm %s646_s16, 128  ;;  %s481_s27 = scalar_lea.hbm %s690_s2, 256 }
 0x181   : > { %p478_p4 = scmp.ne.s32.totalorder %s646_s16, %s477_s24  ;;  %p482_p9 = scmp.lt.u32.totalorder %s646_s16, %s690_s2 }
 0x182   : > { %p483_p10 = scmp.lt.u32.totalorder %s481_s27, %s477_s24  ;;  %p485_p12 = scmp.lt.u32.totalorder %s477_s24, %s646_s16 }
 0x183   : > { %p479_p7 = pnand %p478_p4, %p590_p5 }
 0x184   : > { %p484_p11 = por %p483_p10, %p482_p9 }
 0x185   : > { %p480_p8 = pneg %p479_p7 }
 0x186   : > { %p486_p13 = por %p485_p12, %p484_p11 }
 0x188   : > { %p487_p0 = pnand %p486_p13, %p480_p8 }
 0x18a   : > { %490 = shalt.err (!%p487_p0)
}
 0x18b   : > { %409 = dma.vmem_to_hbm [thread:$0]  (%p590_p5), %s648_s7, 128, %s646_s16, %s267_s17  }
 0x18c PF: > { %p415_p1 = scmp.ge.s32.totalorder %s525_s12, 2  ;;  %s292_s30 = sand.u32 1, %s513_s9  }
 0x18d   : > { %s293_s3 = scalar_lea.sflag [#allocation3], %s292_s30 }
 0x18e   : > { %p412_p2 = pnand %p415_p1, %p594_p6 }
 0x190   : > { %508 = dma.done.wait (!%p412_p2), %s293_s3, 128  }
 0x191   : > { %510 = vsyncadd (!%p412_p2), %s293_s3, 4294967168  ;;  %p12_p3 = scmp.ge.s32.totalorder %s577_s15, 4   ;;  %s693_s9 = smov %s517_s10 }
 0x192   : > { %s694_s10 = smov %s521_s11  ;;  %s695_s11 = smov %s588_s18 }
 0x193   : > { %s696_s12 = smov %s577_s15  ;;  %14 = sbr.rel (!%p12_p3) target bundleno = 3 (0x3), region = 63 }
 0x19a   :  { %298 = vsyncpa [#allocation3], 1 }
 0x19b   :  { %300 = vsyncpa [#allocation3 + $0x1], 1 }

</bundles_post_ra>
